<compile_context>
chip_gen: v7x
topology: tpu7x:2x2x1
jax: 0.10.0
libtpu: 0.0.40
codegen_flags: <defaults>
</compile_context>

<pallas_src>
import functools

import jax
import jax.numpy as jnp
from jax.experimental import pallas as pl
from jax.experimental.pallas import tpu as pltpu


def _latent_tree_loglik_kernel(z_ref, w_ref, logcoef_ref, out_ref):
    """One batch-tile of the latent-tree loglikelihood (transposed domain).

    z_ref       : (TM, D)       latent codes tile (f32, or bf16 if streaming)
    w_ref       : (K_pad, 2D)   [A | B] folded params: A = -0.5/var, B = mu/var
    logcoef_ref : (K_pad, 1)    log pi_k - 0.5*sum_d log(2*pi*var_kd)
                                - 0.5*sum_d mu_kd^2/var_kd   (pad rows = -1e30)
    out_ref     : (1, 1, TM)    per-sample loglikelihood (lane-dense slab)
    """
    # Upcast (no-op for f32) and transpose ONCE: all subsequent element-wise /
    # reduce work is lane-dense (D, TM), and the MXU contraction below is
    # canonical (no implicit XLU transpose of the large zz operand).
    zt = z_ref[...].astype(jnp.float32).T            # (D, TM)   XLU, small
    zzt = jnp.concatenate([zt * zt, zt], axis=0)     # (2D, TM)  sublane concat
    # Canonical MXU matmul:  logp^T[k, m] = sum_c w[k, c] * zzt[c, m]
    logp_t = jax.lax.dot_general(
        w_ref[...], zzt,
        dimension_numbers=(((1,), (0,)), ((), ())),
        preferred_element_type=jnp.float32)          # (K_pad, TM)
    logp_t = logp_t + logcoef_ref[...]               # (K_pad, 1) bcast over lanes
    # logsumexp over components (sublane axis) -> lane-dense (1, TM)
    m = jnp.max(logp_t, axis=0, keepdims=True)
    s = jnp.sum(jnp.exp(logp_t - m), axis=0, keepdims=True)
    out_ref[0] = m + jnp.log(s)                      # (1, TM)


def _round_up(x, m):
    return ((x + m - 1) // m) * m


def _cdiv(a, b):
    return (a + b - 1) // b


@functools.partial(jax.jit, static_argnames=("tm", "stream_bf16"))
def latent_tree_loglikelihood(z, log_pi, mu, var, *, tm=4096, stream_bf16=False):
    """Pallas forward of LatentTreeModule: per-sample log p(z).

    z           : (N, D) latent codes
    log_pi      : (K,)   log mixture weights of the discrete root
    mu          : (K, D) pouch conditional means
    var         : (K, D) pouch conditional variances (diagonal)
    tm          : requested batch tile (rounded to a multiple of 128, clamped
                  to [128, 8192]); tiles are rebalanced so the grid has >= 2
                  (preferably even) steps when N > 128 (v7x megacore).
    stream_bf16 : stream z as bf16 (halves the HBM read the kernel is bound
                  by); relaxes accuracy to ~1e-2 relative, so off by default.
    returns     : (N,)   float32 loglikelihoods
    """
    n, d = z.shape
    k = log_pi.shape[0]

    z = z.astype(jnp.bfloat16 if stream_bf16 else jnp.float32)
    mu = mu.astype(jnp.float32)
    var = var.astype(jnp.float32)
    log_pi = log_pi.astype(jnp.float32)

    # Fold parameters: logp_k(z) = logcoef_k + sum_d a_kd z_d^2 + sum_d b_kd z_d
    inv_var = 1.0 / var                               # (K, D)
    a = -0.5 * inv_var                                # (K, D)
    b = mu * inv_var                                  # (K, D)
    w = jnp.concatenate([a, b], axis=1)               # (K, 2D)
    logcoef = (log_pi
               - 0.5 * jnp.sum(jnp.log(2.0 * jnp.pi * var), axis=1)
               - 0.5 * jnp.sum(mu * mu * inv_var, axis=1))    # (K,)

    # Pad K to a sublane multiple (8).  Padded logcoef uses a large finite
    # negative (-1e30, NOT -inf) so exp(logp - m) stays NaN-free.
    k_pad = _round_up(k, 8)
    if k_pad != k:
        w = jnp.pad(w, ((0, k_pad - k), (0, 0)))
        logcoef = jnp.pad(logcoef, (0, k_pad - k), constant_values=-1e30)
    logcoef = logcoef.reshape(k_pad, 1)

    # ---- Batch tiling: NO wrapper-side padding of z (that would add a full
    # extra HBM pass over the one stream this kernel is bound by).  The grid
    # is cdiv(n, tm_eff); Pallas clamps the final block's input DMA, and the
    # unspecified OOB rows only contaminate their own output lanes, which are
    # sliced off below. ----
    tm = min(8192, max(128, (int(tm) // 128) * 128))
    num_tiles = _cdiv(n, tm)
    if n > 128:
        num_tiles = max(num_tiles, 2)      # v7x megacore: >= 1 step per TC
        if num_tiles % 2:
            num_tiles += 1                 # prefer an even split across 2 TCs
    # Balanced tiles (never rounds n up to a whole extra tile's worth of work).
    tm_eff = max(128, _round_up(_cdiv(n, num_tiles), 128))
    grid0 = _cdiv(n, tm_eff)

    out = pl.pallas_call(
        _latent_tree_loglik_kernel,
        out_shape=jax.ShapeDtypeStruct((grid0, 1, tm_eff), jnp.float32),
        grid_spec=pltpu.PrefetchScalarGridSpec(
            num_scalar_prefetch=0,
            grid=(grid0,),
            in_specs=[
                # z tile (pipelined stream; VMEM footprint is tm*512 B/buffer
                # because the 32-wide minor dim is lane-padded to 128).
                pl.BlockSpec((tm_eff, d), lambda i: (i, 0)),
                pl.BlockSpec((k_pad, 2 * d), lambda i: (0, 0)),   # w (resident)
                pl.BlockSpec((k_pad, 1), lambda i: (0, 0)),       # logcoef (resident)
            ],
            out_specs=pl.BlockSpec((1, 1, tm_eff), lambda i: (i, 0, 0)),
        ),
        compiler_params=pltpu.CompilerParams(
            dimension_semantics=("parallel",),
            vmem_limit_bytes=32 * 1024 * 1024),
    )(z, w, logcoef)
    return out.reshape(grid0 * tm_eff)[:n]


def _reference_loglikelihood(z, log_pi, mu, var):
    """Pure-JAX reference (what pyltm computes for a single-root pouch tree)."""
    diff = z[:, None, :] - mu[None, :, :]                          # (N, K, D)
    logp = (log_pi[None, :]
            - 0.5 * jnp.sum(jnp.log(2.0 * jnp.pi * var), axis=1)[None, :]
            - 0.5 * jnp.sum(diff * diff / var[None, :, :], axis=-1))
    return jax.scipy.special.logsumexp(logp, axis=1)


if __name__ == "__main__":
    key = jax.random.PRNGKey(0)
    D, K = 32, 16                  # latent dim, # root states

    k_z, k_pi, k_mu, k_var, k_z2, k_z3 = jax.random.split(key, 6)
    logits = jax.random.normal(k_pi, (K,), dtype=jnp.float32)
    log_pi = jax.nn.log_softmax(logits)
    mu = 0.5 * jax.random.normal(k_mu, (K, D), dtype=jnp.float32)
    var = 0.5 + jax.nn.softplus(jax.random.normal(k_var, (K, D),
                                                  dtype=jnp.float32))

    # Small batch (single 128-row tile, 16 valid rows -> ragged read path).
    z = jax.random.normal(k_z, (16, D), dtype=jnp.float32)
    out = jax.block_until_ready(latent_tree_loglikelihood(z, log_pi, mu, var))
    ref = _reference_loglikelihood(z, log_pi, mu, var)
    assert out.shape == (16,) and out.dtype == jnp.float32
    assert jnp.allclose(out, ref, rtol=1e-4, atol=1e-4), (out, ref)

    # Ragged batch with a multi-step grid (300 -> 3 tiles of 128, ragged tail,
    # no wrapper padding).
    z2 = jax.random.normal(k_z2, (300, D), dtype=jnp.float32)
    out2 = jax.block_until_ready(
        latent_tree_loglikelihood(z2, log_pi, mu, var, tm=128))
    ref2 = _reference_loglikelihood(z2, log_pi, mu, var)
    assert out2.shape == (300,) and out2.dtype == jnp.float32
    assert jnp.allclose(out2, ref2, rtol=1e-4, atol=1e-4), (out2, ref2)

    # Default (large) tile with forced 2-step grid (1000 -> 2 tiles of 512,
    # ragged tail) -- exercises the megacore-friendly tile rebalancing.
    z3 = jax.random.normal(k_z3, (1000, D), dtype=jnp.float32)
    out3 = jax.block_until_ready(latent_tree_loglikelihood(z3, log_pi, mu, var))
    ref3 = _reference_loglikelihood(z3, log_pi, mu, var)
    assert out3.shape == (1000,) and out3.dtype == jnp.float32
    assert jnp.allclose(out3, ref3, rtol=1e-4, atol=1e-4), (out3, ref3)

    # Opt-in bf16 z streaming (halved HBM traffic); relaxed tolerance.
    out_bf = jax.block_until_ready(
        latent_tree_loglikelihood(z2, log_pi, mu, var, stream_bf16=True))
    assert out_bf.shape == (300,) and out_bf.dtype == jnp.float32
    assert jnp.allclose(out_bf, ref2, rtol=2e-2, atol=5e-1), (out_bf, ref2)

    print("KERNEL_OK")
</pallas_src>

<mosaic_0001>
module attributes {stable_mosaic.version = 11 : i64} {
  func.func @_latent_tree_loglik_kernel(%arg0: i32, %arg1: memref<128x32xf32, #tpu.memory_space<vmem>>, %arg2: memref<16x64xf32, #tpu.memory_space<vmem>>, %arg3: memref<16x1xf32, #tpu.memory_space<vmem>>, %arg4: memref<1x1x128xf32, #tpu.memory_space<vmem>>) attributes {dimension_semantics = [#tpu.dimension_semantics<parallel>], iteration_bounds = array<i64: 1>, scalar_prefetch = 0 : i64, scratch_operands = 0 : i64, tpu.core_type = #tpu.core_type<tc>, window_params = [{transform_indices = @transform_0, window_bounds = array<i64: 128, 32>}, {pipeline_mode = #tpu.pipeline_mode<synchronous>, transform_indices = @transform_1, window_bounds = array<i64: 16, 64>}, {pipeline_mode = #tpu.pipeline_mode<synchronous>, transform_indices = @transform_2, window_bounds = array<i64: 16, 1>}, {transform_indices = @transform_3, window_bounds = array<i64: 1, 1, 128>}]} {
    %c0 = arith.constant 0 : index
    %c0_0 = arith.constant 0 : index
    %0 = vector.load %arg1[%c0, %c0_0] : memref<128x32xf32, #tpu.memory_space<vmem>>, vector<128x32xf32>
    %1 = tpu.transpose %0, [1, 0] : vector<128x32xf32> -> vector<32x128xf32>
    %2 = arith.mulf %1, %1 : vector<32x128xf32>
    %3 = tpu.concatenate %2, %1 in 0 : vector<32x128xf32>, vector<32x128xf32> -> vector<64x128xf32>
    %c0_1 = arith.constant 0 : index
    %c0_2 = arith.constant 0 : index
    %4 = vector.load %arg2[%c0_1, %c0_2] : memref<16x64xf32, #tpu.memory_space<vmem>>, vector<16x64xf32>
    %cst = arith.constant dense<0.000000e+00> : vector<16x128xf32>
    %5 = tpu.matmul %4, %3, %cst {dimension_numbers = #tpu.dot_dimension_numbers<[1], [0], [0], [1], [0, 0, 1, 1], [], []>} : vector<16x64xf32>, vector<64x128xf32>, vector<16x128xf32> -> vector<16x128xf32>
    %c0_3 = arith.constant 0 : index
    %c0_4 = arith.constant 0 : index
    %6 = vector.load %arg3[%c0_3, %c0_4] : memref<16x1xf32, #tpu.memory_space<vmem>>, vector<16x1xf32>
    %7 = vector.broadcast %6 : vector<16x1xf32> to vector<16x128xf32>
    %8 = arith.addf %5, %7 : vector<16x128xf32>
    %cst_5 = arith.constant dense<0xFF800000> : vector<128xf32>
    %9 = vector.multi_reduction <maximumf>, %8, %cst_5 [0] : vector<16x128xf32> to vector<128xf32>
    %10 = vector.shape_cast %9 : vector<128xf32> to vector<1x128xf32>
    %11 = vector.broadcast %10 : vector<1x128xf32> to vector<16x128xf32>
    %12 = arith.subf %8, %11 : vector<16x128xf32>
    %13 = math.exp %12 : vector<16x128xf32>
    %cst_6 = arith.constant dense<0.000000e+00> : vector<128xf32>
    %14 = vector.multi_reduction <add>, %13, %cst_6 [0] : vector<16x128xf32> to vector<128xf32>
    %15 = vector.shape_cast %14 : vector<128xf32> to vector<1x128xf32>
    %16 = math.log %15 : vector<1x128xf32>
    %17 = arith.addf %10, %16 : vector<1x128xf32>
    %c0_7 = arith.constant 0 : index
    %c0_8 = arith.constant 0 : index
    %c0_9 = arith.constant 0 : index
    %18 = vector.load %arg4[%c0_7, %c0_8, %c0_9] : memref<1x1x128xf32, #tpu.memory_space<vmem>>, vector<1x1x128xf32>
    %19 = vector.shape_cast %18 : vector<1x1x128xf32> to vector<1x128xf32>
    %20 = vector.shape_cast %17 : vector<1x128xf32> to vector<1x1x128xf32>
    tpu.vector_store %arg4[%c0_7, %c0_8, %c0_9], %20 {strides = array<i32>} : memref<1x1x128xf32, #tpu.memory_space<vmem>>, vector<1x1x128xf32>,
    return
  }
  func.func @transform_0(%arg0: i32) -> (i32, i32) {
    %c0_i32 = arith.constant 0 : i32
    %c0_i32_0 = arith.constant 0 : i32
    return %arg0, %c0_i32 : i32, i32
  }
  func.func @transform_1(%arg0: i32) -> (i32, i32) {
    %c0_i32 = arith.constant 0 : i32
    %c0_i32_0 = arith.constant 0 : i32
    %c0_i32_1 = arith.constant 0 : i32
    return %c0_i32, %c0_i32_0 : i32, i32
  }
  func.func @transform_2(%arg0: i32) -> (i32, i32) {
    %c0_i32 = arith.constant 0 : i32
    %c0_i32_0 = arith.constant 0 : i32
    %c0_i32_1 = arith.constant 0 : i32
    return %c0_i32, %c0_i32_0 : i32, i32
  }
  func.func @transform_3(%arg0: i32) -> (i32, i32, i32) {
    %c0_i32 = arith.constant 0 : i32
    %c0_i32_0 = arith.constant 0 : i32
    %c0_i32_1 = arith.constant 0 : i32
    return %arg0, %c0_i32, %c0_i32_0 : i32, i32, i32
  }
}

</mosaic_0001>

<bundles_post_ra>
// kernel: latent_tree_loglikelihood.1
= control target key start
LH: loop header
LB: loop body
LE: loop exit
PB: predicated region body
PF: predicated region fallthrough
CT: control target
= control target key end

     0   :  { %vm80_vm0 = vcmask 523264   ;;  %v246_v10 = vmov 0   ;;  %s332_s0 = inlined_call_operand.vmem [shape: f32[16,32], index: 0, kind: input, shape index: {}]   ;;  %s333_s1 = inlined_call_operand.vmem [shape: f32[16,64], index: 1, kind: input, shape index: {}]   ;;  %s334_s2 = inlined_call_operand.vmem [shape: f32[16,1], index: 2, kind: input, shape index: {}]   ;;  %s335_s3 = inlined_call_operand.vmem [shape: f32[1,1,128], index: 3, kind: output, shape index: {}]  }
   0x1   :  { %v14_v0 = vld [vmem:[%s332_s0] sm:$0xff]  ;;  %v15_v1 = vld [vmem:[%s332_s0 + $0x8] sm:$0xff]  ;;  %v16_v2 = vld [vmem:[%s332_s0 + $0x10] sm:$0xff]  ;;  %238 = vset.pattern.permute.xlu1 %v246_v10 }
   0x2   :  { %30 = vxpose.xlu0.b32.start [1/16] (narrow) %v14_v0, 32  ;;  %v17_v3 = vld [vmem:[%s332_s0 + $0x18] sm:$0xff]  ;;  %v18_v4 = vld [vmem:[%s332_s0 + $0x20] sm:$0xff]  ;;  %v19_v5 = vld [vmem:[%s332_s0 + $0x28] sm:$0xff] }
   0x3   :  { %v20_v6 = vld [vmem:[%s332_s0 + $0x30] sm:$0xff]  ;;  %v21_v7 = vld [vmem:[%s332_s0 + $0x38] sm:$0xff]  ;;  %v66_v8 = vld [vmem:[%s333_s1] sm:$0xff] }
   0x4   :  { %218 = vmatprep.mubr.msk.f32.mxu0 %vm80_vm0, %v66_v8  ;;  %v22_v9 = vld [vmem:[%s332_s0 + $0x40] sm:$0xff]  ;;  %v69_v12 = vld [vmem:[%s334_s2 + $0x8] sm:$0xff]  ;;  %v24_v14 = vld [vmem:[%s332_s0 + $0x50] sm:$0xff] }
   0x5   :  { %v68_v11 = vld [vmem:[%s334_s2] sm:$0xff]  ;;  %v23_v13 = vld [vmem:[%s332_s0 + $0x48] sm:$0xff]  ;;  %v25_v15 = vld [vmem:[%s332_s0 + $0x58] sm:$0xff] }
   0x6   :  { %31 = vxpose.xlu0.b32.cont [2/16] (narrow) %v15_v1, 32  ;;  %72 = vperm.xlu1 %238, %v68_v11   ;;  %v26_v16 = vld [vmem:[%s332_s0 + $0x60] sm:$0xff]  ;;  %v27_v17 = vld [vmem:[%s332_s0 + $0x68] sm:$0xff]  ;;  %v28_v18 = vld [vmem:[%s332_s0 + $0x70] sm:$0xff] }
   0x7   :  { %v29_v19 = vld [vmem:[%s332_s0 + $0x78] sm:$0xff]  ;;  %v67_v32 = vld [vmem:[%s333_s1 + $0x8] sm:$0xff] }
   0xa   :  { %32 = vxpose.xlu0.b32.cont [3/16] (narrow) %v16_v2, 32  ;;  %77 = vperm.xlu1 %238, %v69_v12  }
   0xe   :  { %33 = vxpose.xlu0.b32.cont [4/16] (narrow) %v17_v3, 32 }
  0x12   :  { %34 = vxpose.xlu0.b32.cont [5/16] (narrow) %v18_v4, 32 }
  0x16   :  { %35 = vxpose.xlu0.b32.cont [6/16] (narrow) %v19_v5, 32 }
  0x1a   :  { %36 = vxpose.xlu0.b32.cont [7/16] (narrow) %v20_v6, 32 }
  0x1e   :  { %37 = vxpose.xlu0.b32.cont [8/16] (narrow) %v21_v7, 32 }
  0x22   :  { %38 = vxpose.xlu0.b32.cont [9/16] (narrow) %v22_v9, 32 }
  0x26   :  { %39 = vxpose.xlu0.b32.cont [10/16] (narrow) %v23_v13, 32 }
  0x2a   :  { %40 = vxpose.xlu0.b32.cont [11/16] (narrow) %v24_v14, 32 }
  0x2e   :  { %41 = vxpose.xlu0.b32.cont [12/16] (narrow) %v25_v15, 32 }
  0x32   :  { %42 = vxpose.xlu0.b32.cont [13/16] (narrow) %v26_v16, 32 }
  0x36   :  { %43 = vxpose.xlu0.b32.cont [14/16] (narrow) %v27_v17, 32 }
  0x3a   :  { %44 = vxpose.xlu0.b32.cont [15/16] (narrow) %v28_v18, 32 }
  0x3e   :  { %45 = vxpose.xlu0.b32.end [16/16] (narrow) %v29_v19, 32 }
  0x67   :  { %239 = vset.pattern.permute.xlu0 %v246_v10 }
  0x82   :  { %v46_v20 = vpop.trf.xlu0 }
  0x83   :  { %v62_v22 = vmul.f32 %v46_v20, %v46_v20 }
  0x85   :  { %v73_v33 = vpop.permute.xlu1 %72 }
  0x86   :  { %v47_v21 = vpop.trf.xlu0 }
  0x87   :  { %v63_v23 = vmul.f32 %v47_v21, %v47_v21  ;;  %v229_v30 = vpack.c.bf16 %v47_v21, %v46_v20 }
  0x89   :  { %v221_v24 = vpack.c.bf16 %v63_v23, %v62_v22  ;;  %v78_v34 = vpop.permute.xlu1 %77 }
  0x8a   :  { %v48_v25 = vpop.trf.xlu0 }
  0x8b   :  { %222 = vmatprep.subr.bf16.mxu0 %v221_v24  ;;  %v64_v27 = vmul.f32 %v48_v25, %v48_v25 }
  0x8c   :  { %224 = vmatpush3.bf16.msra.mxu0 %v221_v24 }
  0x8e   :  { %v49_v26 = vpop.trf.xlu0 }
  0x8f   :  { %v65_v28 = vmul.f32 %v49_v26, %v49_v26  ;;  %v233_v31 = vpack.c.bf16 %v49_v26, %v48_v25 }
  0x91   :  { %v225_v29 = vpack.c.bf16 %v65_v28, %v64_v27 }
  0x93   :  { %226 = vmatprep.subr.bf16.mxu0 %v225_v29 }
  0x94   :  { %228 = vmatpush3.bf16.msra.mxu0 %v225_v29 }
  0x95   :  { %230 = vmatprep.subr.bf16.mxu0 %v229_v30 }
  0x98   :  { %232 = vmatpush3.bf16.msra.mxu0 %v229_v30 }
  0x99   :  { %234 = vmatprep.subr.bf16.mxu0 %v233_v31 }
  0x9c   :  { %236 = vmatpush3.bf16.msra.mxu0 %v233_v31 }
  0x9f   :  { %219 = vmatmul.mubr.msk.f32.vlgmr.msra.gmra.mrb[0].mxu0 %vm80_vm0, %v67_v32 }
 0x172   :  { %v220_v35 = vpop.f32.mrb[0].mxu0 }
 0x173   :  { %v159_v36 = vadd.f32 %v220_v35, %v78_v34  ;;  %v153_v37 = vpop.f32.mrb[1].mxu0 }
 0x174   :  { %v154_v38 = vadd.f32 %v153_v37, %v73_v33 }
 0x176   :  { %v162_v39 = vmax.f32 %v154_v38, %v159_v36 }
 0x178   :  { %v163_v40 = vrot.slane %v162_v39, 4 }
 0x17a   :  { %v164_v41 = vmax.f32 %v162_v39, %v163_v40 }
 0x17c   :  { %v165_v42 = vrot.slane %v164_v41, 2 }
 0x17e   :  { %v166_v43 = vmax.f32 %v164_v41, %v165_v42 }
 0x180   :  { %v167_v44 = vrot.slane %v166_v43, 1 }
 0x182   :  { %v168_v45 = vmax.f32 %v166_v43, %v167_v44 }
 0x184   :  { %v169_v46 = vsub.f32 %v154_v38, %v168_v45  ;;  %v170_v47 = vsub.f32 %v159_v36, %v168_v45 }
 0x186   :  { %v171_v48 = vmul.f32 1.442695, %v169_v46  ;;  %v173_v49 = vmul.f32 1.442695, %v170_v47 }
 0x188   :  { %240 = vpow2.f32 %v171_v48 }
 0x189   :  { %242 = vpow2.f32 %v173_v49 }
 0x192   :  { %v241_v50 = vpop.eup %240 }
 0x193   :  { %v243_v51 = vpop.eup %242 }
 0x194   :  { %v175_v52 = vadd.f32 %v243_v51, %v241_v50 }
 0x196   :  { %v176_v53 = vrot.slane %v175_v52, 4 }
 0x198   :  { %v177_v54 = vadd.f32 %v176_v53, %v175_v52 }
 0x19a   :  { %v178_v55 = vrot.slane %v177_v54, 2 }
 0x19c   :  { %v179_v56 = vadd.f32 %v178_v55, %v177_v54 }
 0x19e   :  { %v180_v57 = vrot.slane %v179_v56, 1 }
 0x1a0   :  { %v181_v58 = vadd.f32 %v180_v57, %v179_v56 }
 0x1a2   :  { %244 = vlog2.f32 %v181_v58 }
 0x1ac   :  { %v245_v59 = vpop.eup %244 }
 0x1ad   :  { %v183_v60 = vmul.f32 0.6931472, %v245_v59 }
 0x1af   :  { %v184_v61 = vadd.f32 %v183_v60, %v168_v45 }
 0x1b1   :  { %185 = vst [vmem:[%s335_s3] sm:$0x1] %v184_v61 }

</bundles_post_ra>
